<compile_context>
chip_gen: v6e
topology: v6e:2x2x1
jax: 0.10.0
libtpu: 0.0.40
codegen_flags: <defaults>
</compile_context>

<pallas_src>
import functools

import jax
import jax.numpy as jnp
from jax.experimental import pallas as pl
from jax.experimental.pallas import tpu as pltpu


def _round_up(n: int, m: int) -> int:
    return ((n + m - 1) // m) * m


def mlp_kernel(x_ref, w1_ref, b1_ref, w2_ref, b2_ref, w3_ref, b3_ref, o_ref):
    # x_ref: (TB, D) tile of the batch; weights fully resident each step.
    cdt = w1_ref.dtype  # compute dtype of the matmul inputs (bf16 or f32)
    x = x_ref[...]

    h1 = jnp.dot(x, w1_ref[...], preferred_element_type=jnp.float32) + b1_ref[...]
    h1 = jnp.maximum(h1, 0.0)                       # f32 VPU work (v5e-safe)

    h2 = jnp.dot(h1.astype(cdt), w2_ref[...],
                 preferred_element_type=jnp.float32) + b2_ref[...]
    h2 = jnp.maximum(h2, 0.0)

    out = jnp.dot(h2.astype(cdt), w3_ref[...],
                  preferred_element_type=jnp.float32) + b3_ref[...]
    o_ref[...] = out.astype(o_ref.dtype)


def _choose_batch_tile(B: int, tb_max: int) -> int:
    """Pick a batch tile: as large as possible, but >=2 grid steps when the
    batch allows it so v7x's two TensorCores both get work."""
    bp = _round_up(B, 8)                 # f32 sublane multiple
    if bp <= 2 * tb_max:
        if bp >= 16:
            return _round_up(pl.cdiv(bp, 2), 8)   # two parallel tiles
        return bp                                  # tiny batch: single tile
    return tb_max


def _pad_params_lane_dense(params, pad_to=128):
    """Zero-pad hidden dims up to a multiple of 128 (lane-dense vregs).
    ReLU(0) = 0 and zero weight rows/cols keep the math bit-identical."""
    w1, b1, w2, b2, w3, b3 = params
    h1, h2 = w1.shape[1], w2.shape[1]
    h1p, h2p = _round_up(h1, pad_to), _round_up(h2, pad_to)
    w1 = jnp.pad(w1, ((0, 0), (0, h1p - h1)))
    b1 = jnp.pad(b1, ((0, 0), (0, h1p - h1)))
    w2 = jnp.pad(w2, ((0, h1p - h1), (0, h2p - h2)))
    b2 = jnp.pad(b2, ((0, 0), (0, h2p - h2)))
    w3 = jnp.pad(w3, ((0, h2p - h2), (0, 0)))
    return w1, b1, w2, b2, w3, b3


@functools.partial(jax.jit, static_argnames=("tb_max", "compute_dtype"))
def pu_estimator_forward(x, params, *, tb_max=1024, compute_dtype=jnp.bfloat16):
    """Fused 3-layer MLP forward (the PUEstimator / SimpleMLP hot path)."""
    w1, b1, w2, b2, w3, b3 = _pad_params_lane_dense(params)
    B, D = x.shape
    H1 = w1.shape[1]
    H2 = w2.shape[1]
    O = w3.shape[1]

    # --- batch tiling: pad B up to a multiple of the (large) tile ----------
    tb = _choose_batch_tile(B, tb_max)
    b_pad = _round_up(B, tb)
    if b_pad != B:
        x = jnp.pad(x, ((0, b_pad - B), (0, 0)))
    grid = (b_pad // tb,)

    # --- dtype: bf16 matmul inputs, f32 biases / accumulation --------------
    x = x.astype(compute_dtype)
    w1 = w1.astype(compute_dtype)
    w2 = w2.astype(compute_dtype)
    w3 = w3.astype(compute_dtype)
    b1 = b1.astype(jnp.float32)
    b2 = b2.astype(jnp.float32)
    b3 = b3.astype(jnp.float32)

    x_spec = pl.BlockSpec((tb, D), lambda i: (i, 0))
    w1_spec = pl.BlockSpec((D, H1), lambda i: (0, 0))
    b1_spec = pl.BlockSpec((1, H1), lambda i: (0, 0))
    w2_spec = pl.BlockSpec((H1, H2), lambda i: (0, 0))
    b2_spec = pl.BlockSpec((1, H2), lambda i: (0, 0))
    w3_spec = pl.BlockSpec((H2, O), lambda i: (0, 0))
    b3_spec = pl.BlockSpec((1, O), lambda i: (0, 0))
    o_spec = pl.BlockSpec((tb, O), lambda i: (i, 0))

    csize = jnp.dtype(compute_dtype).itemsize
    flops = 2 * b_pad * (D * H1 + H1 * H2 + H2 * O)
    bytes_accessed = (
        b_pad * D * csize                               # X read
        + (D * H1 + H1 * H2 + H2 * O) * csize           # weights
        + (H1 + H2 + O) * 4                             # biases
        + b_pad * O * 4                                 # output write
    )

    out = pl.pallas_call(
        mlp_kernel,
        out_shape=jax.ShapeDtypeStruct((b_pad, O), jnp.float32),
        grid_spec=pltpu.PrefetchScalarGridSpec(
            num_scalar_prefetch=0,
            grid=grid,
            in_specs=[x_spec, w1_spec, b1_spec, w2_spec, b2_spec, w3_spec, b3_spec],
            out_specs=o_spec,
        ),
        compiler_params=pltpu.CompilerParams(
            dimension_semantics=("parallel",),
        ),
        cost_estimate=pl.CostEstimate(
            flops=flops, transcendentals=0, bytes_accessed=bytes_accessed
        ),
    )(x, w1, b1, w2, b2, w3, b3)

    return out[:B]


def init_params(key, input_size, hidden_sizes=(64, 64), out_size=2):
    """Deterministic init mimicking PyTorch nn.Linear defaults
    (U[-1/sqrt(fan_in), 1/sqrt(fan_in)]); weights stored (in, out)."""
    sizes = [input_size] + list(hidden_sizes) + [out_size]
    params = []
    for fan_in, fan_out in zip(sizes[:-1], sizes[1:]):
        key, kw, kb = jax.random.split(key, 3)
        bound = 1.0 / jnp.sqrt(fan_in)
        w = jax.random.uniform(kw, (fan_in, fan_out), jnp.float32, -bound, bound)
        b = jax.random.uniform(kb, (1, fan_out), jnp.float32, -bound, bound)
        params.extend([w, b])
    return tuple(params)


def reference_forward(x, params):
    w1, b1, w2, b2, w3, b3 = params
    h1 = jnp.maximum(x @ w1 + b1, 0.0)
    h2 = jnp.maximum(h1 @ w2 + b2, 0.0)
    return h2 @ w3 + b3


if __name__ == "__main__":
    key = jax.random.PRNGKey(0)
    k_x, k_p, k_x2 = jax.random.split(key, 3)

    batch = 16
    input_size = 32

    x = jax.random.normal(k_x, (batch, input_size), dtype=jnp.float32)
    params = init_params(k_p, input_size)
    ref = reference_forward(x, params)

    # f32 compute path: bit-for-bit-ish check against the pure-JAX reference.
    out_f32 = jax.block_until_ready(
        pu_estimator_forward(x, params, compute_dtype=jnp.float32)
    )
    assert out_f32.shape == (batch, 2)
    assert jnp.allclose(out_f32, ref, atol=1e-5, rtol=1e-5)

    # Default perf path: bf16 matmul inputs, f32 accumulation (looser check).
    out_bf16 = jax.block_until_ready(pu_estimator_forward(x, params))
    assert out_bf16.shape == (batch, 2)
    assert jnp.allclose(out_bf16, ref, atol=5e-2, rtol=5e-2)

    # Exercise the batch-padding / multi-tile path (B not a tile multiple).
    batch2 = 100
    x2 = jax.random.normal(k_x2, (batch2, input_size), dtype=jnp.float32)
    ref2 = reference_forward(x2, params)
    out2 = jax.block_until_ready(pu_estimator_forward(x2, params))
    assert out2.shape == (batch2, 2)
    assert jnp.allclose(out2, ref2, atol=5e-2, rtol=5e-2)

    print("KERNEL_OK")
</pallas_src>

<mosaic_0001>
module attributes {stable_mosaic.version = 11 : i64} {
  func.func @mlp_kernel(%arg0: i32, %arg1: memref<8x32xf32, #tpu.memory_space<vmem>>, %arg2: memref<32x128xf32, #tpu.memory_space<vmem>>, %arg3: memref<1x128xf32, #tpu.memory_space<vmem>>, %arg4: memref<128x128xf32, #tpu.memory_space<vmem>>, %arg5: memref<1x128xf32, #tpu.memory_space<vmem>>, %arg6: memref<128x2xf32, #tpu.memory_space<vmem>>, %arg7: memref<1x2xf32, #tpu.memory_space<vmem>>, %arg8: memref<8x2xf32, #tpu.memory_space<vmem>>) attributes {dimension_semantics = [#tpu.dimension_semantics<parallel>], iteration_bounds = array<i64: 2>, scalar_prefetch = 0 : i64, scratch_operands = 0 : i64, tpu.core_type = #tpu.core_type<tc>, window_params = [{transform_indices = @transform_0, window_bounds = array<i64: 8, 32>}, {pipeline_mode = #tpu.pipeline_mode<synchronous>, transform_indices = @transform_1, window_bounds = array<i64: 32, 128>}, {pipeline_mode = #tpu.pipeline_mode<synchronous>, transform_indices = @transform_2, window_bounds = array<i64: 1, 128>}, {pipeline_mode = #tpu.pipeline_mode<synchronous>, transform_indices = @transform_3, window_bounds = array<i64: 128, 128>}, {pipeline_mode = #tpu.pipeline_mode<synchronous>, transform_indices = @transform_4, window_bounds = array<i64: 1, 128>}, {pipeline_mode = #tpu.pipeline_mode<synchronous>, transform_indices = @transform_5, window_bounds = array<i64: 128, 2>}, {pipeline_mode = #tpu.pipeline_mode<synchronous>, transform_indices = @transform_6, window_bounds = array<i64: 1, 2>}, {transform_indices = @transform_7, window_bounds = array<i64: 8, 2>}]} {
    %c0 = arith.constant 0 : index
    %c0_0 = arith.constant 0 : index
    %0 = vector.load %arg1[%c0, %c0_0] : memref<8x32xf32, #tpu.memory_space<vmem>>, vector<8x32xf32>
    %c0_1 = arith.constant 0 : index
    %c0_2 = arith.constant 0 : index
    %1 = vector.load %arg2[%c0_1, %c0_2] : memref<32x128xf32, #tpu.memory_space<vmem>>, vector<32x128xf32>
    %cst = arith.constant dense<0.000000e+00> : vector<8x128xf32>
    %2 = tpu.matmul %0, %1, %cst {dimension_numbers = #tpu.dot_dimension_numbers<[1], [0], [0], [1], [0, 0, 1, 1], [], []>} : vector<8x32xf32>, vector<32x128xf32>, vector<8x128xf32> -> vector<8x128xf32>
    %c0_3 = arith.constant 0 : index
    %c0_4 = arith.constant 0 : index
    %3 = vector.load %arg3[%c0_3, %c0_4] : memref<1x128xf32, #tpu.memory_space<vmem>>, vector<1x128xf32>
    %4 = vector.broadcast %3 : vector<1x128xf32> to vector<8x128xf32>
    %5 = arith.addf %2, %4 : vector<8x128xf32>
    %cst_5 = arith.constant 0.000000e+00 : f32
    %6 = vector.broadcast %cst_5 : f32 to vector<8x128xf32>
    %7 = arith.maximumf %5, %6 : vector<8x128xf32>
    %c0_6 = arith.constant 0 : index
    %c0_7 = arith.constant 0 : index
    %8 = vector.load %arg4[%c0_6, %c0_7] : memref<128x128xf32, #tpu.memory_space<vmem>>, vector<128x128xf32>
    %cst_8 = arith.constant dense<0.000000e+00> : vector<8x128xf32>
    %9 = tpu.matmul %7, %8, %cst_8 {dimension_numbers = #tpu.dot_dimension_numbers<[1], [0], [0], [1], [0, 0, 1, 1], [], []>} : vector<8x128xf32>, vector<128x128xf32>, vector<8x128xf32> -> vector<8x128xf32>
    %c0_9 = arith.constant 0 : index
    %c0_10 = arith.constant 0 : index
    %10 = vector.load %arg5[%c0_9, %c0_10] : memref<1x128xf32, #tpu.memory_space<vmem>>, vector<1x128xf32>
    %11 = vector.broadcast %10 : vector<1x128xf32> to vector<8x128xf32>
    %12 = arith.addf %9, %11 : vector<8x128xf32>
    %cst_11 = arith.constant 0.000000e+00 : f32
    %13 = vector.broadcast %cst_11 : f32 to vector<8x128xf32>
    %14 = arith.maximumf %12, %13 : vector<8x128xf32>
    %c0_12 = arith.constant 0 : index
    %c0_13 = arith.constant 0 : index
    %15 = vector.load %arg6[%c0_12, %c0_13] : memref<128x2xf32, #tpu.memory_space<vmem>>, vector<128x2xf32>
    %cst_14 = arith.constant dense<0.000000e+00> : vector<8x2xf32>
    %16 = tpu.matmul %14, %15, %cst_14 {dimension_numbers = #tpu.dot_dimension_numbers<[1], [0], [0], [1], [0, 0, 1, 1], [], []>} : vector<8x128xf32>, vector<128x2xf32>, vector<8x2xf32> -> vector<8x2xf32>
    %c0_15 = arith.constant 0 : index
    %c0_16 = arith.constant 0 : index
    %17 = vector.load %arg7[%c0_15, %c0_16] : memref<1x2xf32, #tpu.memory_space<vmem>>, vector<1x2xf32>
    %18 = vector.broadcast %17 : vector<1x2xf32> to vector<8x2xf32>
    %19 = arith.addf %16, %18 : vector<8x2xf32>
    %c0_17 = arith.constant 0 : index
    %c0_18 = arith.constant 0 : index
    %20 = vector.load %arg8[%c0_17, %c0_18] : memref<8x2xf32, #tpu.memory_space<vmem>>, vector<8x2xf32>
    tpu.vector_store %arg8[%c0_17, %c0_18], %19 {strides = array<i32>} : memref<8x2xf32, #tpu.memory_space<vmem>>, vector<8x2xf32>,
    return
  }
  func.func @transform_0(%arg0: i32) -> (i32, i32) {
    %c0_i32 = arith.constant 0 : i32
    %c0_i32_0 = arith.constant 0 : i32
    return %arg0, %c0_i32 : i32, i32
  }
  func.func @transform_1(%arg0: i32) -> (i32, i32) {
    %c0_i32 = arith.constant 0 : i32
    %c0_i32_0 = arith.constant 0 : i32
    %c0_i32_1 = arith.constant 0 : i32
    return %c0_i32, %c0_i32_0 : i32, i32
  }
  func.func @transform_2(%arg0: i32) -> (i32, i32) {
    %c0_i32 = arith.constant 0 : i32
    %c0_i32_0 = arith.constant 0 : i32
    %c0_i32_1 = arith.constant 0 : i32
    return %c0_i32, %c0_i32_0 : i32, i32
  }
  func.func @transform_3(%arg0: i32) -> (i32, i32) {
    %c0_i32 = arith.constant 0 : i32
    %c0_i32_0 = arith.constant 0 : i32
    %c0_i32_1 = arith.constant 0 : i32
    return %c0_i32, %c0_i32_0 : i32, i32
  }
  func.func @transform_4(%arg0: i32) -> (i32, i32) {
    %c0_i32 = arith.constant 0 : i32
    %c0_i32_0 = arith.constant 0 : i32
    %c0_i32_1 = arith.constant 0 : i32
    return %c0_i32, %c0_i32_0 : i32, i32
  }
  func.func @transform_5(%arg0: i32) -> (i32, i32) {
    %c0_i32 = arith.constant 0 : i32
    %c0_i32_0 = arith.constant 0 : i32
    %c0_i32_1 = arith.constant 0 : i32
    return %c0_i32, %c0_i32_0 : i32, i32
  }
  func.func @transform_6(%arg0: i32) -> (i32, i32) {
    %c0_i32 = arith.constant 0 : i32
    %c0_i32_0 = arith.constant 0 : i32
    %c0_i32_1 = arith.constant 0 : i32
    return %c0_i32, %c0_i32_0 : i32, i32
  }
  func.func @transform_7(%arg0: i32) -> (i32, i32) {
    %c0_i32 = arith.constant 0 : i32
    %c0_i32_0 = arith.constant 0 : i32
    return %arg0, %c0_i32 : i32, i32
  }
}

</mosaic_0001>

<bundles_post_ra>
// kernel: pu_estimator_forward.1
= control target key start
LH: loop header
LB: loop body
LE: loop exit
PB: predicated region body
PF: predicated region fallthrough
CT: control target
= control target key end

     0   :  { %s796_s24 = smov 0   ;;  %s979_s0 = inlined_call_operand.vmem [shape: f32[16,32], index: 0, kind: input, shape index: {}]   ;;  %s980_s1 = inlined_call_operand.vmem [shape: f32[32,128], index: 1, kind: input, shape index: {}]   ;;  %s981_s2 = inlined_call_operand.vmem [shape: f32[1,128], index: 2, kind: input, shape index: {}]   ;;  %s982_s3 = inlined_call_operand.vmem [shape: f32[128,128], index: 3, kind: input, shape index: {}]   ;;  %s983_s4 = inlined_call_operand.vmem [shape: f32[1,128], index: 4, kind: input, shape index: {}]   ;;  %s984_s5 = inlined_call_operand.vmem [shape: f32[128,2], index: 5, kind: input, shape index: {}]   ;;  %s985_s6 = inlined_call_operand.vmem [shape: f32[1,2], index: 6, kind: input, shape index: {}]   ;;  %s986_s7 = inlined_call_operand.vmem [shape: f32[16,2], index: 7, kind: output, shape index: {}]  }
   0x1 LB: > { %s603_s25 = sadd.s32 4294967295, %s752_s24   ;;  %p607_p0 = scmp.ge.s32.totalorder %s752_s24, 1  ;;  %s752_s24 = sphi %s796_s24, %s17_s24  }
   0x2   : > { %p236_p1 = scmp.lt.s32.totalorder %s752_s24, 3 }
   0x4   : > { %p237_p2 = pnand %p607_p0, %p236_p1 }
   0x5   : > { %p266_p3 = scmp.lt.s32.totalorder (!%p237_p2), %s603_s25, 1 }
   0x6   : > { %240 = sbr.rel (%p237_p2) target bundleno = 610 (0x262), region = 48 }
   0xb   : > { %v278_v0 = vld [vmem:[%s980_s1 + $0x18] sm:$0xff]  ;;  %v754_v1 = vmov 0.0   ;;  %v277_v2 = vld [vmem:[%s980_s1 + $0x10] sm:$0xff]  ;;  %vm755_vm0 = vmmov 0   ;;  %s988_s25 = smov (!%p266_p3, %s603_s25), 1  ;;  %v276_v5 = vld [vmem:[%s980_s1 + $0x8] sm:$0xff] }
   0xc   : > { %655 = vmatprep.subr.mxu0 %v754_v1  ;;  %663 = vmatprep.mubr.msk.f32.mxu0 %vm755_vm0, %v754_v1  ;;  %v376_v3 = vld [vmem:[%s982_s3 + $0x78] sm:$0xff]  ;;  %v375_v4 = vld [vmem:[%s982_s3 + $0x70] sm:$0xff]  ;;  %s608_s13 = sshll.u32 %s988_s25, 3  ;;  %v374_v6 = vld [vmem:[%s982_s3 + $0x68] sm:$0xff]  ;;  %vm286_vm1 = vcmask 261120   ;;  %vm548_vm2 = vcmask 15360  }
   0xd   : > { %656 = vmatpush3.msra.mxu0 %v278_v0  ;;  %666 = vmatprep.subr.mxu1 %v754_v1  ;;  %v275_v7 = vld [vmem:[%s980_s1] sm:$0xff]  ;;  %s269_s20 = scalar_lea.vmem %s979_s0, %s608_s13  ;;  %v372_v10 = vld [vmem:[%s982_s3 + $0x58] sm:$0xff]  ;;  %v371_v11 = vld [vmem:[%s982_s3 + $0x50] sm:$0xff]  ;;  %s273_s29 = scalar_lea.vmem %s986_s7, %s608_s13 }
   0xe   : > { %657 = vmatprep.subr.mxu0 %v754_v1  ;;  %667 = vmatpush3.msra.mxu1 %v376_v3  ;;  %v274_v8 = vld [vmem:[%s269_s20] sm:$0xff]  ;;  %v370_v12 = vld [vmem:[%s982_s3 + $0x48] sm:$0xff]  ;;  %v368_v14 = vld [vmem:[%s982_s3 + $0x38] sm:$0xff] }
   0xf   : > { %658 = vmatpush3.msra.mxu0 %v277_v2  ;;  %668 = vmatprep.subr.mxu1 %v754_v1  ;;  %v373_v9 = vld [vmem:[%s982_s3 + $0x60] sm:$0xff]  ;;  %v367_v15 = vld [vmem:[%s982_s3 + $0x30] sm:$0xff]  ;;  %v366_v16 = vld [vmem:[%s982_s3 + $0x28] sm:$0xff] }
  0x10   : > { %659 = vmatprep.subr.mxu0 %v754_v1  ;;  %669 = vmatpush3.msra.mxu1 %v375_v4  ;;  %v369_v13 = vld [vmem:[%s982_s3 + $0x40] sm:$0xff]  ;;  %v364_v18 = vld [vmem:[%s982_s3 + $0x18] sm:$0xff]  ;;  %v363_v19 = vld [vmem:[%s982_s3 + $0x10] sm:$0xff] }
  0x11   : > { %660 = vmatpush3.msra.mxu0 %v276_v5  ;;  %670 = vmatprep.subr.mxu1 %v754_v1  ;;  %v365_v17 = vld [vmem:[%s982_s3 + $0x20] sm:$0xff]  ;;  %v362_v20 = vld [vmem:[%s982_s3 + $0x8] sm:$0xff]  ;;  %v470_v22 = vld [vmem:[%s984_s5 + $0x78] sm:$0xff] }
  0x12   : > { %661 = vmatprep.subr.mxu0 %v754_v1  ;;  %671 = vmatpush3.msra.mxu1 %v374_v6  ;;  %v361_v21 = vld [vmem:[%s982_s3] sm:$0xff]  ;;  %v469_v23 = vld [vmem:[%s984_s5 + $0x70] sm:$0xff]  ;;  %v468_v24 = vld [vmem:[%s984_s5 + $0x68] sm:$0xff] }
  0x13   : > { %662 = vmatpush3.msra.mxu0 %v275_v7  ;;  %672 = vmatprep.subr.mxu1 %v754_v1  ;;  %v467_v25 = vld [vmem:[%s984_s5 + $0x60] sm:$0xff]  ;;  %v466_v26 = vld [vmem:[%s984_s5 + $0x58] sm:$0xff]  ;;  %v465_v27 = vld [vmem:[%s984_s5 + $0x50] sm:$0xff] }
  0x14   : > { %664 = vmatmul.mubr.msk.f32.vlgmr.msra.gmra.mxu0 %vm286_vm1, %v274_v8  ;;  %673 = vmatpush3.msra.mxu1 %v373_v9  ;;  %v464_v28 = vld [vmem:[%s984_s5 + $0x48] sm:$0xff]  ;;  %v463_v29 = vld [vmem:[%s984_s5 + $0x40] sm:$0xff]  ;;  %v462_v30 = vld [vmem:[%s984_s5 + $0x38] sm:$0xff] }
  0x15   : > { %674 = vmatprep.subr.mxu1 %v754_v1  ;;  %698 = vmatprep.mubr.msk.f32.mxu1 %vm755_vm0, %v754_v1  ;;  %v461_v31 = vld [vmem:[%s984_s5 + $0x30] sm:$0xff]  ;;  %v460_v32 = vld [vmem:[%s984_s5 + $0x28] sm:$0xff]  ;;  %v459_v33 = vld [vmem:[%s984_s5 + $0x20] sm:$0xff] }
  0x16   : > { %675 = vmatpush3.msra.mxu1 %v372_v10  ;;  %701 = vmatprep.subr.mxu0 %v754_v1  ;;  %v458_v34 = vld [vmem:[%s984_s5 + $0x18] sm:$0xff]  ;;  %v610_v35 = vld [vmem:[%s981_s2] ss:$0 sm:$0xff]  ;;  %v457_v40 = vld [vmem:[%s984_s5 + $0x10] sm:$0xff] }
  0x17   : > { %676 = vmatprep.subr.mxu1 %v754_v1  ;;  %733 = vmatprep.mubr.msk.f32.mxu0 %vm755_vm0, %v754_v1  ;;  %v456_v41 = vld [vmem:[%s984_s5 + $0x8] sm:$0xff]  ;;  %v455_v42 = vld [vmem:[%s984_s5] sm:$0xff] }
  0x18   : > { %677 = vmatpush3.msra.mxu1 %v371_v11  ;;  %702 = vmatpush3.msra.mxu0 %v470_v22  ;;  %v612_v43 = vld [vmem:[%s983_s4] ss:$0 sm:$0xff] }
  0x19   : > { %678 = vmatprep.subr.mxu1 %v754_v1  ;;  %703 = vmatprep.subr.mxu0 %v754_v1  ;;  %v613_v48 = vld [vmem:[%s985_s6] ss:$0 sm:$0xff] }
  0x1a   : > { %679 = vmatpush3.msra.mxu1 %v370_v12  ;;  %704 = vmatpush3.msra.mxu0 %v469_v23 }
  0x1b   : > { %680 = vmatprep.subr.mxu1 %v754_v1  ;;  %705 = vmatprep.subr.mxu0 %v754_v1 }
  0x1c   : > { %681 = vmatpush3.msra.mxu1 %v369_v13  ;;  %706 = vmatpush3.msra.mxu0 %v468_v24 }
  0x1d   : > { %682 = vmatprep.subr.mxu1 %v754_v1  ;;  %707 = vmatprep.subr.mxu0 %v754_v1 }
  0x1e   : > { %683 = vmatpush3.msra.mxu1 %v368_v14  ;;  %708 = vmatpush3.msra.mxu0 %v467_v25 }
  0x1f   : > { %684 = vmatprep.subr.mxu1 %v754_v1  ;;  %709 = vmatprep.subr.mxu0 %v754_v1 }
  0x20   : > { %685 = vmatpush3.msra.mxu1 %v367_v15  ;;  %710 = vmatpush3.msra.mxu0 %v466_v26 }
  0x21   : > { %686 = vmatprep.subr.mxu1 %v754_v1  ;;  %711 = vmatprep.subr.mxu0 %v754_v1 }
  0x22   : > { %687 = vmatpush3.msra.mxu1 %v366_v16  ;;  %712 = vmatpush3.msra.mxu0 %v465_v27 }
  0x23   : > { %688 = vmatprep.subr.mxu1 %v754_v1  ;;  %713 = vmatprep.subr.mxu0 %v754_v1 }
  0x24   : > { %689 = vmatpush3.msra.mxu1 %v365_v17  ;;  %714 = vmatpush3.msra.mxu0 %v464_v28 }
  0x25   : > { %690 = vmatprep.subr.mxu1 %v754_v1  ;;  %715 = vmatprep.subr.mxu0 %v754_v1 }
  0x26   : > { %691 = vmatpush3.msra.mxu1 %v364_v18  ;;  %716 = vmatpush3.msra.mxu0 %v463_v29 }
  0x27   : > { %692 = vmatprep.subr.mxu1 %v754_v1  ;;  %717 = vmatprep.subr.mxu0 %v754_v1 }
  0x28   : > { %693 = vmatpush3.msra.mxu1 %v363_v19  ;;  %718 = vmatpush3.msra.mxu0 %v462_v30 }
  0x29   : > { %694 = vmatprep.subr.mxu1 %v754_v1  ;;  %719 = vmatprep.subr.mxu0 %v754_v1 }
  0x2a   : > { %695 = vmatpush3.msra.mxu1 %v362_v20  ;;  %720 = vmatpush3.msra.mxu0 %v461_v31 }
  0x2b   : > { %696 = vmatprep.subr.mxu1 %v754_v1  ;;  %721 = vmatprep.subr.mxu0 %v754_v1 }
  0x2c   : > { %697 = vmatpush3.msra.mxu1 %v361_v21  ;;  %722 = vmatpush3.msra.mxu0 %v460_v32 }
  0x2d   : > { %723 = vmatprep.subr.mxu0 %v754_v1 }
  0x2e   : > { %724 = vmatpush3.msra.mxu0 %v459_v33 }
  0x2f   : > { %725 = vmatprep.subr.mxu0 %v754_v1 }
  0x30   : > { %726 = vmatpush3.msra.mxu0 %v458_v34 }
  0x31   : > { %727 = vmatprep.subr.mxu0 %v754_v1 }
  0x32   : > { %728 = vmatpush3.msra.mxu0 %v457_v40 }
  0x33   : > { %729 = vmatprep.subr.mxu0 %v754_v1 }
  0x34   : > { %730 = vmatpush3.msra.mxu0 %v456_v41 }
  0x35   : > { %731 = vmatprep.subr.mxu0 %v754_v1 }
  0x36   : > { %732 = vmatpush3.msra.mxu0 %v455_v42 }
  0xd4   : > { %v356_v36 = vpop.f32.mrf.mxu0 }
  0xd5   : > { %v357_v37 = vadd.f32 %v610_v35, %v356_v36 }
  0xd6   : > { %v665_v38 = vpop.f32.mrf.mxu0 }
  0xd7   : > { %v360_v39 = vmax.f32 %v357_v37, 0.0 }
  0xd9   : > { %699 = vmatmul.mubr.f32.vlgmr.msra.gmra.mxu1 %v360_v39 }
 0x199   : > { %v450_v44 = vpop.f32.mrf.mxu1 }
 0x19a   : > { %v451_v45 = vadd.f32 %v612_v43, %v450_v44 }
 0x19b   : > { %v700_v46 = vpop.f32.mrf.mxu1 }
 0x19c   : > { %v454_v47 = vmax.f32 %v451_v45, 0.0 }
 0x19e   : > { %734 = vmatmul.mubr.f32.vlgmr.msra.gmra.mxu0 %v454_v47 }
 0x25e   : > { %v544_v49 = vpop.f32.mrf.mxu0 }
 0x25f   : > { %v545_v50 = vadd.f32 %v613_v48, %v544_v49 }
 0x260   : > { %v735_v51 = vpop.f32.mrf.mxu0 }
 0x261   : > { %549 = vst.msk [vmem:[%s273_s29] sm:$0xff] %vm548_vm2, %v545_v50 }
 0x262 PF: > { %s17_s24 = sadd.s32 1, %s752_s24  }
 0x263   : > { %p14_p4 = scmp.ge.s32.totalorder %s17_s24, 4  }
 0x265   :  { %16 = sbr.rel (!%p14_p4) target bundleno = 1 (0x1), region = 78 }

</bundles_post_ra>
